<compile_context>
chip_gen: v5e
topology: v5e:2x2
jax: 0.10.0
libtpu: 0.0.40
codegen_flags: <defaults>
</compile_context>

<pallas_src>
import jax
import jax.numpy as jnp
from jax.experimental import pallas as pl
from jax.experimental.pallas import tpu as pltpu


# ----------------------------------------------------------------------------
# Tiled projection matmul (fused qkv projection and o projection)
# ----------------------------------------------------------------------------
def _matmul_kernel(x_ref, w_ref, o_ref, acc_ref):
    @pl.when(pl.program_id(2) == 0)
    def _():
        acc_ref[...] = jnp.zeros_like(acc_ref)

    acc_ref[...] += jnp.dot(x_ref[...], w_ref[...],
                            preferred_element_type=jnp.float32)

    @pl.when(pl.program_id(2) == pl.num_programs(2) - 1)
    def _():
        o_ref[...] = acc_ref[...].astype(o_ref.dtype)


def _pick_tk(K, cap):
    """Largest K-tile <= cap that divides K and keeps blocks layout-legal."""
    cap = min(cap, K)
    if K <= cap:
        return K
    for c in range(cap - cap % 128, 0, -128):   # 128-multiples only (lane rule)
        if K % c == 0:
            return c
    return K   # TODO(synk): pad K + mask for awkward K instead of full-K panel


def pallas_matmul(x, w, out_dtype=jnp.float32, tm=512, tn=512, tk=512):
    M, K = x.shape
    K2, N = w.shape
    assert K == K2
    tm, tn = min(tm, M), min(tn, N)
    tk = _pick_tk(K, tk)
    grid = (pl.cdiv(M, tm), pl.cdiv(N, tn), K // tk)

    in_b = jnp.dtype(x.dtype).itemsize
    w_b = jnp.dtype(w.dtype).itemsize
    out_b = jnp.dtype(out_dtype).itemsize
    # double-buffered in/out blocks + f32 accumulator
    est = 2 * (tm * tk * in_b + tk * tn * w_b) + 2 * tm * tn * out_b + tm * tn * 4
    vmem_limit = int(min(64 * 2**20, max(32 * 2**20, est * 1.5)))

    cost = pl.CostEstimate(
        flops=int(2 * M * N * K), transcendentals=0,
        bytes_accessed=int(M * K * in_b + K * N * w_b + M * N * out_b))

    return pl.pallas_call(
        _matmul_kernel,
        out_shape=jax.ShapeDtypeStruct((M, N), out_dtype),
        grid=grid,
        in_specs=[pl.BlockSpec((tm, tk), lambda i, j, k: (i, k)),
                  pl.BlockSpec((tk, tn), lambda i, j, k: (k, j))],
        out_specs=pl.BlockSpec((tm, tn), lambda i, j, k: (i, j)),
        scratch_shapes=[pltpu.VMEM((tm, tn), jnp.float32)],
        compiler_params=pltpu.CompilerParams(
            dimension_semantics=("parallel", "parallel", "arbitrary"),
            vmem_limit_bytes=vmem_limit),
        cost_estimate=cost,
    )(x, w)


# ----------------------------------------------------------------------------
# Fused RoPE + (+/- fused) Hedgehog feature map + chunked causal linear attn
# ----------------------------------------------------------------------------
def _linear_attn_kernel(q_ref, k_ref, v_ref, cos_ref, sin_ref, wq_ref, wk_ref,
                        o_ref, s_ref):
    H, D, F2 = wq_ref.shape          # F2 = 2 * feature_dim (weights are [W, -W])
    F = F2 // 2
    T = q_ref.shape[1]
    KVH = k_ref.shape[2] // D
    qpg = H // KVH
    half = D // 2
    scale = F2 ** -0.5               # (2F)^-0.5, folded into phi(q)

    # Reset the carried per-head states S = sum phi(k)^T v at chunk 0.
    @pl.when(pl.program_id(1) == 0)
    def _():
        s_ref[...] = jnp.zeros_like(s_ref)

    cosf = cos_ref[...]              # (T, D) f32, [cos, cos]
    sinf = sin_ref[...]              # (T, D) f32, [-sin, sin]

    # Hoisted intra-chunk causal mask and +/- lane mask.
    row = jax.lax.broadcasted_iota(jnp.int32, (T, T), 0)
    col = jax.lax.broadcasted_iota(jnp.int32, (T, T), 1)
    causal = col <= row
    lane = jax.lax.broadcasted_iota(jnp.int32, (T, F2), 1)
    is_pos = lane < F

    qb = q_ref[0]                    # (T, H*D)   bf16
    kb = k_ref[0]                    # (T, KVH*D) bf16
    vb = v_ref[0]                    # (T, KVH*D) bf16

    def rope(x_bf):
        x = x_bf.astype(jnp.float32)
        if D % 128 == 0:
            # lane-aligned: rotate on the XLU, no lane-boundary concat
            rot = pltpu.roll(x, shift=half, axis=-1)
        else:
            rot = jnp.concatenate([x[:, half:], x[:, :half]], axis=-1)
        return (x * cosf + rot * sinf).astype(jnp.bfloat16)

    def half_softmax(z):
        # z = x @ [W, -W]  ->  [softmax(xW), softmax(-xW)] without any concat.
        m_p = jnp.max(jnp.where(is_pos, z, -jnp.inf), axis=-1, keepdims=True)
        m_n = jnp.max(jnp.where(is_pos, -jnp.inf, z), axis=-1, keepdims=True)
        e = jnp.exp(z - jnp.where(is_pos, m_p, m_n))
        d_p = jnp.sum(jnp.where(is_pos, e, 0.0), axis=-1, keepdims=True)
        d_n = jnp.sum(jnp.where(is_pos, 0.0, e), axis=-1, keepdims=True)
        return jnp.maximum(e / jnp.where(is_pos, d_p, d_n), 1e-12)

    # chunk_linear_attn with chunk_size=1 == causal (unnormalized) linear attn:
    #   o_t = sum_{s<=t} (phi(q_t) . phi(k_s)) v_s, with phi(q) scaled by (2F)^-0.5
    # TODO(synk): chunk_linear_attn source not provided; canonical FLA
    #             unnormalized variant assumed (matches the reference below).
    for kv in range(KVH):
        k_rot = rope(kb[:, kv * D:(kv + 1) * D])         # shared across the group
        v_g = vb[:, kv * D:(kv + 1) * D]                  # (T, D) bf16
        for j in range(qpg):                              # GQA query heads of kv
            h = kv * qpg + j
            q_rot = rope(qb[:, h * D:(h + 1) * D])

            zq = jnp.dot(q_rot, wq_ref[h], preferred_element_type=jnp.float32)
            zk = jnp.dot(k_rot, wk_ref[h], preferred_element_type=jnp.float32)
            fq = (half_softmax(zq) * scale).astype(jnp.bfloat16)   # (T, 2F)
            fk = half_softmax(zk).astype(jnp.bfloat16)             # (T, 2F)

            # inter-chunk contribution: phi(q) @ S_prev
            o = jnp.dot(fq, s_ref[h].astype(jnp.bfloat16),
                        preferred_element_type=jnp.float32)
            # intra-chunk causal contribution
            sc = jax.lax.dot_general(fq, fk, (((1,), (1,)), ((), ())),
                                     preferred_element_type=jnp.float32)
            sc = jnp.where(causal, sc, 0.0).astype(jnp.bfloat16)
            o += jnp.dot(sc, v_g, preferred_element_type=jnp.float32)

            # carry the state forward: S += phi(k)^T v   (f32 accumulation)
            s_ref[h] += jax.lax.dot_general(fk, v_g, (((0,), (0,)), ((), ())),
                                            preferred_element_type=jnp.float32)

            # immediate per-head store (static lane offset; lane-dense when D%128==0)
            o_ref[0, :, h * D:(h + 1) * D] = o.astype(o_ref.dtype)


# ----------------------------------------------------------------------------
# Module wrapper
# ----------------------------------------------------------------------------
class GemmaLinearAttentionPallas:
    def __init__(self, hidden_size, num_heads, num_kv_heads, head_dim,
                 feature_dim, key):
        self.hidden_size = hidden_size
        self.num_heads = num_heads
        self.num_kv_heads = num_kv_heads
        self.head_dim = head_dim
        self.feature_dim = feature_dim
        ks = jax.random.split(key, 6)
        s = 0.02
        # f32 masters (used by the pure-JAX reference); PyTorch nn.Linear is
        # (out, in) -- we keep the transposed (in, out).
        self.wq_t = (jax.random.normal(ks[0], (hidden_size, num_heads * head_dim)) * s).astype(jnp.float32)
        self.wk_t = (jax.random.normal(ks[1], (hidden_size, num_kv_heads * head_dim)) * s).astype(jnp.float32)
        self.wv_t = (jax.random.normal(ks[2], (hidden_size, num_kv_heads * head_dim)) * s).astype(jnp.float32)
        self.wo_t = (jax.random.normal(ks[3], (num_heads * head_dim, hidden_size)) * s).astype(jnp.float32)
        self.wq_feat = jax.random.uniform(ks[4], (num_heads, head_dim, feature_dim),
                                          minval=-0.5, maxval=0.5).astype(jnp.float32)
        self.wk_feat = jax.random.uniform(ks[5], (num_heads, head_dim, feature_dim),
                                          minval=-0.5, maxval=0.5).astype(jnp.float32)

        bf = jnp.bfloat16
        # bf16 weights built once (no per-call cast pass):
        #   fused [Wq | Wk | Wv]  and  +/- fused Hedgehog weights [W, -W].
        self._w_qkv_bf = jnp.concatenate([self.wq_t, self.wk_t, self.wv_t], axis=1).astype(bf)
        self._wo_bf = self.wo_t.astype(bf)
        self._wq2_bf = jnp.concatenate([self.wq_feat, -self.wq_feat], axis=-1).astype(bf)
        self._wk2_bf = jnp.concatenate([self.wk_feat, -self.wk_feat], axis=-1).astype(bf)

    def __call__(self, hidden_states, cos, sin, mask=None, seq_chunk=256):
        # mask is unused in the linear (train_attn=False) path, as in PyTorch.
        # seq_chunk: 256 for v6e/v7x; 128 recommended on v5e (128-wide MXU).
        B, L, Dm = hidden_states.shape
        H, KVH, D, F = self.num_heads, self.num_kv_heads, self.head_dim, self.feature_dim
        F2 = 2 * F
        bf = jnp.bfloat16

        # Fused QKV projection: activations read once, single pipelined matmul.
        x2d = hidden_states.reshape(B * L, Dm).astype(bf)
        qkv = pallas_matmul(x2d, self._w_qkv_bf, out_dtype=bf)
        q = qkv[:, :H * D].reshape(B, L, H * D)
        k = qkv[:, H * D:(H + KVH) * D].reshape(B, L, KVH * D)
        v = qkv[:, (H + KVH) * D:].reshape(B, L, KVH * D)

        # Full-width RoPE tables: cos_full = [cos, cos], sin_signed = [-sin, sin]
        cos_full = jnp.concatenate([cos, cos], axis=-1).astype(jnp.float32)      # (L, D)
        sin_sgn = jnp.concatenate([-sin, sin], axis=-1).astype(jnp.float32)      # (L, D)

        # Sequence chunk: largest multiple-of-8 divisor of L <= seq_chunk.
        T = min(seq_chunk, L)
        if L % T != 0:
            T = L
            for cand in range(min(seq_chunk, L), 7, -1):
                if cand % 8 == 0 and L % cand == 0:
                    T = cand
                    break
        nc = L // T

        # VMEM budget: state + double-buffered q/k/v/o blocks + tables + weights.
        est = (H * F2 * D * 4
               + 2 * ((T * H * D + 2 * T * KVH * D + T * H * D) * 2
                      + 2 * T * D * 4 + 2 * H * D * F2 * 2))
        vmem_limit = int(min(64 * 2**20, max(32 * 2**20, est * 1.5)))
        # TODO(synk): on v7x (64 MiB VMEM/TC) shrink seq_chunk if est nears ~48 MiB.

        flops = int(B * nc * H * (2 * T * D * F2 * 2      # q/k feature projections
                                  + 2 * T * T * F2        # scores
                                  + 2 * T * T * D         # scores @ v
                                  + 2 * T * F2 * D * 2))  # inter-chunk + state update
        transc = int(B * L * H * F2 * 2)
        bytes_acc = int((B * L * (H + 2 * KVH) * D) * 2 + B * L * H * D * 2
                        + 2 * L * D * 4 + 2 * H * D * F2 * 2)

        attn = pl.pallas_call(
            _linear_attn_kernel,
            out_shape=jax.ShapeDtypeStruct((B, L, H * D), bf),
            grid=(B, nc),
            in_specs=[
                pl.BlockSpec((1, T, H * D), lambda b, l: (b, l, 0)),
                pl.BlockSpec((1, T, KVH * D), lambda b, l: (b, l, 0)),
                pl.BlockSpec((1, T, KVH * D), lambda b, l: (b, l, 0)),
                pl.BlockSpec((T, D), lambda b, l: (l, 0)),
                pl.BlockSpec((T, D), lambda b, l: (l, 0)),
                pl.BlockSpec((H, D, F2), lambda b, l: (0, 0, 0)),
                pl.BlockSpec((H, D, F2), lambda b, l: (0, 0, 0)),
            ],
            out_specs=pl.BlockSpec((1, T, H * D), lambda b, l: (b, l, 0)),
            scratch_shapes=[pltpu.VMEM((H, F2, D), jnp.float32)],  # S = sum phi(k)^T v
            compiler_params=pltpu.CompilerParams(
                dimension_semantics=("parallel", "arbitrary"),
                vmem_limit_bytes=vmem_limit),
            cost_estimate=pl.CostEstimate(flops=flops, transcendentals=transc,
                                          bytes_accessed=bytes_acc),
        )(q, k, v, cos_full, sin_sgn, self._wq2_bf, self._wk2_bf)

        # o-projection kept in f32 for parity with the PyTorch module's output dtype.
        out = pallas_matmul(attn.reshape(B * L, H * D), self._wo_bf,
                            out_dtype=jnp.float32)
        return {"hidden_states": out.reshape(B, L, Dm)}


# ----------------------------------------------------------------------------
# Pure-JAX f32 reference (mirrors the PyTorch forward) for verification
# ----------------------------------------------------------------------------
def reference_forward(mod, x, cos, sin):
    B, L, Dm = x.shape
    H, KVH, D = mod.num_heads, mod.num_kv_heads, mod.head_dim
    qpg = H // KVH
    q = (x.reshape(B * L, Dm) @ mod.wq_t).reshape(B, L, H, D)
    k = (x.reshape(B * L, Dm) @ mod.wk_t).reshape(B, L, KVH, D)
    v = (x.reshape(B * L, Dm) @ mod.wv_t).reshape(B, L, KVH, D)

    def rope(t):
        x1, x2 = t[..., :D // 2], t[..., D // 2:]
        c = cos[None, :, None, :]
        s = sin[None, :, None, :]
        return jnp.concatenate([x1 * c - x2 * s, x1 * s + x2 * c], axis=-1)

    q, k = rope(q), rope(k)
    k = jnp.repeat(k, qpg, axis=2)   # repeat_interleave
    v = jnp.repeat(v, qpg, axis=2)
    q, k, v = (t.transpose(0, 2, 1, 3) for t in (q, k, v))

    def fmap(t, w):
        z = jnp.einsum('hdf,bhld->bhlf', w, t)
        return jnp.maximum(
            jnp.concatenate([jax.nn.softmax(z, -1), jax.nn.softmax(-z, -1)], -1), 1e-12)

    fq, fk = fmap(q, mod.wq_feat), fmap(k, mod.wk_feat)
    scale = fq.shape[-1] ** -0.5
    scores = jnp.einsum('bhld,bhmd->bhlm', fq * scale, fk)
    scores = jnp.where(jnp.tril(jnp.ones((L, L), bool)), scores, 0.0)
    o = jnp.einsum('bhlm,bhmd->bhld', scores, v)
    o = o.transpose(0, 2, 1, 3).reshape(B, L, H * D)
    return o @ mod.wo_t


def rope_cos_sin(L, D, theta=10000.0):
    inv = 1.0 / (theta ** (jnp.arange(0, D, 2, dtype=jnp.float32) / D))
    ang = jnp.outer(jnp.arange(L, dtype=jnp.float32), inv)   # (L, D/2)
    return jnp.cos(ang), jnp.sin(ang)


if __name__ == "__main__":
    B, L = 2, 16
    hidden_size, num_heads, num_kv_heads, head_dim, feature_dim = 32, 4, 2, 16, 8

    key = jax.random.PRNGKey(0)
    k_param, k_x = jax.random.split(key)
    mod = GemmaLinearAttentionPallas(hidden_size, num_heads, num_kv_heads,
                                     head_dim, feature_dim, k_param)

    x = jax.random.normal(k_x, (B, L, hidden_size), dtype=jnp.float32)
    cos, sin = rope_cos_sin(L, head_dim)

    # seq_chunk=8 -> two sequence chunks, exercising the carried-state recurrence.
    out = mod(x, cos, sin, mask=None, seq_chunk=8)
    y = jax.block_until_ready(out["hidden_states"])

    y_ref = reference_forward(mod, x, cos, sin)
    assert y.shape == (B, L, hidden_size)
    # bf16 MXU operands (f32 accumulation) -> looser tolerance than pure-f32.
    assert jnp.allclose(y, y_ref, atol=2e-3, rtol=2e-2), "mismatch vs reference"
    print("KERNEL_OK")
</pallas_src>

<mosaic_0001>
module attributes {stable_mosaic.version = 11 : i64} {
  func.func @_matmul_kernel(%arg0: i32, %arg1: i32, %arg2: i32, %arg3: memref<32x32xbf16, #tpu.memory_space<vmem>>, %arg4: memref<32x128xbf16, #tpu.memory_space<vmem>>, %arg5: memref<32x128xbf16, #tpu.memory_space<vmem>>, %arg6: memref<32x128xf32, #tpu.memory_space<vmem>>) attributes {dimension_semantics = [#tpu.dimension_semantics<parallel>, #tpu.dimension_semantics<parallel>, #tpu.dimension_semantics<arbitrary>], iteration_bounds = array<i64: 1, 1, 1>, scalar_prefetch = 0 : i64, scratch_operands = 1 : i64, tpu.core_type = #tpu.core_type<tc>, window_params = [{transform_indices = @transform_0, window_bounds = array<i64: 32, 32>}, {transform_indices = @transform_1, window_bounds = array<i64: 32, 128>}, {transform_indices = @transform_2, window_bounds = array<i64: 32, 128>}]} {
    %c0_i32 = arith.constant 0 : i32
    %0 = arith.cmpi eq, %arg2, %c0_i32 : i32
    %1 = arith.extui %0 : i1 to i32
    %c0_i32_0 = arith.constant 0 : i32
    %2 = arith.cmpi ne, %1, %c0_i32_0 : i32
    scf.if %2 {
      %cst_10 = arith.constant 0.000000e+00 : f32
      %12 = vector.broadcast %cst_10 : f32 to vector<32x128xf32>
      %c0_11 = arith.constant 0 : index
      %c0_12 = arith.constant 0 : index
      %13 = vector.load %arg6[%c0_11, %c0_12] : memref<32x128xf32, #tpu.memory_space<vmem>>, vector<32x128xf32>
      tpu.vector_store %arg6[%c0_11, %c0_12], %12 {strides = array<i32>} : memref<32x128xf32, #tpu.memory_space<vmem>>, vector<32x128xf32>,
    } else {
    }
    %c0 = arith.constant 0 : index
    %c0_1 = arith.constant 0 : index
    %3 = vector.load %arg6[%c0, %c0_1] : memref<32x128xf32, #tpu.memory_space<vmem>>, vector<32x128xf32>
    %c0_2 = arith.constant 0 : index
    %c0_3 = arith.constant 0 : index
    %4 = vector.load %arg3[%c0_2, %c0_3] : memref<32x32xbf16, #tpu.memory_space<vmem>>, vector<32x32xbf16>
    %c0_4 = arith.constant 0 : index
    %c0_5 = arith.constant 0 : index
    %5 = vector.load %arg4[%c0_4, %c0_5] : memref<32x128xbf16, #tpu.memory_space<vmem>>, vector<32x128xbf16>
    %cst = arith.constant dense<0.000000e+00> : vector<32x128xf32>
    %6 = tpu.matmul %4, %5, %cst {dimension_numbers = #tpu.dot_dimension_numbers<[1], [0], [0], [1], [0, 0, 1, 1], [], []>} : vector<32x32xbf16>, vector<32x128xbf16>, vector<32x128xf32> -> vector<32x128xf32>
    %7 = arith.addf %3, %6 : vector<32x128xf32>
    %c0_6 = arith.constant 0 : index
    %c0_7 = arith.constant 0 : index
    %8 = vector.load %arg6[%c0_6, %c0_7] : memref<32x128xf32, #tpu.memory_space<vmem>>, vector<32x128xf32>
    tpu.vector_store %arg6[%c0_6, %c0_7], %7 {strides = array<i32>} : memref<32x128xf32, #tpu.memory_space<vmem>>, vector<32x128xf32>,
    %c0_i32_8 = arith.constant 0 : i32
    %9 = arith.cmpi eq, %arg2, %c0_i32_8 : i32
    %10 = arith.extui %9 : i1 to i32
    %c0_i32_9 = arith.constant 0 : i32
    %11 = arith.cmpi ne, %10, %c0_i32_9 : i32
    scf.if %11 {
      %c0_10 = arith.constant 0 : index
      %c0_11 = arith.constant 0 : index
      %12 = vector.load %arg6[%c0_10, %c0_11] : memref<32x128xf32, #tpu.memory_space<vmem>>, vector<32x128xf32>
      %13 = arith.truncf %12 : vector<32x128xf32> to vector<32x128xbf16>
      %c0_12 = arith.constant 0 : index
      %c0_13 = arith.constant 0 : index
      %14 = vector.load %arg5[%c0_12, %c0_13] : memref<32x128xbf16, #tpu.memory_space<vmem>>, vector<32x128xbf16>
      tpu.vector_store %arg5[%c0_12, %c0_13], %13 {strides = array<i32>} : memref<32x128xbf16, #tpu.memory_space<vmem>>, vector<32x128xbf16>,
    } else {
    }
    return
  }
  func.func @transform_0(%arg0: i32, %arg1: i32, %arg2: i32) -> (i32, i32) {
    %c0_i32 = arith.constant 0 : i32
    return %arg0, %arg2 : i32, i32
  }
  func.func @transform_1(%arg0: i32, %arg1: i32, %arg2: i32) -> (i32, i32) {
    %c0_i32 = arith.constant 0 : i32
    return %arg2, %arg1 : i32, i32
  }
  func.func @transform_2(%arg0: i32, %arg1: i32, %arg2: i32) -> (i32, i32) {
    %c0_i32 = arith.constant 0 : i32
    return %arg0, %arg1 : i32, i32
  }
}

</mosaic_0001>

<bundles_post_ra>
// kernel: tpu_custom_call.1
= control target key start
LH: loop header
LB: loop body
LE: loop exit
PB: predicated region body
PF: predicated region fallthrough
CT: control target
= control target key end

     0   :  { %7 = vsyncpa [#allocation4], 0  ;;  %s312_s0 = inlined_call_operand.hbm [shape: bf16[32,32], index: 0, kind: input, shape index: {}]   ;;  %s313_s1 = inlined_call_operand.hbm [shape: bf16[32,128], index: 1, kind: input, shape index: {}]   ;;  %s314_s2 = inlined_call_operand.hbm [shape: bf16[32,128], index: 2, kind: output, shape index: {}]  }
   0x1   :  { %8 = vsyncpa [#allocation7], 0 }
   0x2   :  { %9 = vsyncpa [#allocation5], 0  ;;  %s14_s11 = sshll.u32 %s312_s0, 4  ;;  %s274_s12 = smov [#allocation3]   ;;  %s15_s11 = int_to_ptr.hbm [resolvable:$true] %s14_s11 }
   0x3   :  { %s16_s13 = sshll.u32 %s274_s12, 4  ;;  %s27_s16 = sshll.u32 %s313_s1, 4  ;;  %s17_s13 = int_to_ptr.vmem [resolvable:$true] %s16_s13  ;;  %s28_s16 = int_to_ptr.hbm [resolvable:$true] %s27_s16 }
   0x4   :  { %s275_s17 = smov 64   ;;  %s276_s18 = smov 4  }
   0x5   :  { %22 = dma.hbm_to_vmem [thread:$0]  %s15_s11, 256, %s17_s13, [#allocation4], %s275_s17, %s275_s17, %s276_s18  }
   0x6   :  { %s277_s19 = smov [#allocation6]  }
   0x7   :  { %s29_s20 = sshll.u32 %s277_s19, 4  ;;  %s30_s20 = int_to_ptr.vmem [resolvable:$true] %s29_s20 }
   0x8   :  { %35 = dma.hbm_to_vmem [thread:$0]  %s28_s16, 256, %s30_s20, [#allocation7], %s275_s17, %s275_s17, %s276_s18  }
   0x9   :  { %268 = dma.done.wait [#allocation4], 256  }
   0xa   :  { %269 = vsyncadd [#allocation4], 4294967040 }
   0xb   :  { %270 = dma.done.wait [#allocation7], 256  }
   0xc   :  { %271 = vsyncadd [#allocation7], 4294967040  ;;  %v177_v0 = vld [vmem:[#allocation6 + $0x8] sm:$0xff]  ;;  %v176_v1 = vld [vmem:[#allocation6] sm:$0xff]  ;;  %vm87_vm0 = vcmask 261120   ;;  %s278_s0 = smov [#allocation8]  }
   0xd   :  { %100 = vmatpush.bf16.msra.mxu0 %v177_v0  ;;  %189 = vmatpush.bf16.msra.mxu1 %v177_v0  ;;  %v174_v2 = vld [vmem:[#allocation3] sm:$0xff]  ;;  %v175_v3 = vld [vmem:[#allocation3 + $0x8] sm:$0xff]  ;;  %s140_s1 = sshll.u32 %s278_s0, 4  ;;  %s142_s23 = sshll.u32 %s314_s2, 4  ;;  %s141_s1 = int_to_ptr.vmem [resolvable:$true] %s140_s1  ;;  %s143_s23 = int_to_ptr.hbm [resolvable:$true] %s142_s23 }
  0x11   :  { %101 = vmatpush.bf16.msra.mxu0 %v176_v1  ;;  %190 = vmatpush.bf16.msra.mxu1 %v176_v1 }
  0x14   :  { %172 = vmatmul.msk.bf16.vlgmr.msra.gmra.mxu0 %vm87_vm0, %v174_v2  ;;  %173 = vmatmul.msk.bf16.vlgmr.msra.gmra.mxu1 %vm87_vm0, %v175_v3 }
  0x91   :  { %v103_v4 = vpop.f32.mrf.mxu0  ;;  %v108_v5 = vpop.f32.mrf.mxu1 }
  0x99   :  { %v105_v6 = vpop.f32.mrf.mxu0  ;;  %v110_v7 = vpop.f32.mrf.mxu1 }
  0x9a   :  { %v181_v8 = vpack.c.bf16 %v105_v6, %v103_v4  ;;  %v186_v9 = vpack.c.bf16 %v110_v7, %v108_v5 }
  0x9c   :  { %182 = vst [vmem:[#allocation8] sm:$0xff] %v181_v8  }
  0x9d   :  { %188 = vst [vmem:[#allocation8 + $0x8] sm:$0xff] %v186_v9  }
  0x9e   :  { %148 = dma.vmem_to_hbm [thread:$0]  %s141_s1, 256, %s143_s23, [#allocation5], %s275_s17, %s275_s17, %s276_s18  }
  0x9f   :  { %272 = dma.done.wait [#allocation5], 256  }
  0xa0   :  { %273 = vsyncadd [#allocation5], 4294967040 }
  0xa1   :  { %153 = vsyncpa [#allocation4], 1 }
  0xa2   :  { %154 = vsyncpa [#allocation7], 1 }
  0xa3   :  { %155 = vsyncpa [#allocation5], 1 }

</bundles_post_ra>
